<compile_context>
chip_gen: v5e
topology: v5e:2x2
jax: 0.10.0
libtpu: 0.0.40
codegen_flags: <defaults>
</compile_context>

<pallas_src>
import numpy as np
import jax
import jax.numpy as jnp
from jax.experimental import pallas as pl
from jax.experimental.pallas import tpu as pltpu

# ---- static module configuration (from __init__ defaults) ----
K0_DIM = 6                      # ShadowMLP default k0_dim
RGB_IN = K0_DIM                 # rgb branch input width          = 6
SHADOW_IN = K0_DIM + 9          # shadow branch input width       = 15
D_IN = K0_DIM + 9               # full input feature width        = 15
WIDTH = 128
SHADOW_WIDTH = WIDTH // 2       # 64
FUSED_WIDTH = WIDTH + SHADOW_WIDTH   # 192
OUT_DIM = 4


def _round_up(v, m):
    return ((v + m - 1) // m) * m


def _default_fuse_middle():
    """Fuse the 192-wide middle layer only on 256x256-MXU chips (v6e / v7x)."""
    try:
        kind = jax.devices()[0].device_kind.lower()
    except Exception:
        return True
    return not any(tag in kind for tag in ("v2", "v3", "v4", "v5"))


# ------------------------- kernels -------------------------
def _fused_kernel(x_ref, w1_ref, b1_ref, w2_ref, b2_ref, w3_ref, b3_ref, o_ref):
    """Fully fused: x(15) @ W1c(15,192) -> relu -> @ W2c(192,192) -> relu -> @ W3c(192,4)."""
    x = x_ref[...]                                                          # [TN, 15]
    h = jnp.dot(x, w1_ref[...], preferred_element_type=jnp.float32) + b1_ref[...]
    h = jnp.maximum(h, 0.0)                                                 # [TN, 192] f32
    h = jnp.dot(h.astype(w2_ref.dtype), w2_ref[...],
                preferred_element_type=jnp.float32) + b2_ref[...]
    h = jnp.maximum(h, 0.0)                                                 # [TN, 192] f32
    o = jnp.dot(h.astype(w3_ref.dtype), w3_ref[...],
                preferred_element_type=jnp.float32) + b3_ref[...]           # [TN, 4]
    o_ref[...] = o.astype(o_ref.dtype)


def _split_middle_kernel(x_ref, w1_ref, b1_ref, w2_ref, b2_ref, w3_ref, b3_ref, o_ref):
    """v5e-friendly: fused first/last layers, plain 128x128 middle matmul."""
    x = x_ref[...]                                                          # [TN, 15]
    h_all = jnp.dot(x, w1_ref[...], preferred_element_type=jnp.float32) + b1_ref[...]
    h_all = jnp.maximum(h_all, 0.0)                                         # [TN, 192]
    h_rgb = h_all[:, :WIDTH]                                                # 128-lane aligned
    h_sh = h_all[:, WIDTH:]                                                 # [TN, 64]
    h2 = jnp.dot(h_rgb.astype(w2_ref.dtype), w2_ref[...],
                 preferred_element_type=jnp.float32) + b2_ref[...]
    h2 = jnp.maximum(h2, 0.0)                                               # [TN, 128]
    h_cat = jnp.concatenate([h2, h_sh], axis=-1)                            # 128-boundary concat
    o = jnp.dot(h_cat.astype(w3_ref.dtype), w3_ref[...],
                preferred_element_type=jnp.float32) + b3_ref[...]           # [TN, 4]
    o_ref[...] = o.astype(o_ref.dtype)


# ------------------------- wrapper -------------------------
def shadow_mlp(x, params, *, tile_n=1024, compute_dtype=jnp.bfloat16, fuse_middle=None):
    """x: [..., 15]; params: 10 arrays (see init_params); returns [..., 4] float32."""
    if fuse_middle is None:
        fuse_middle = _default_fuse_middle()

    w1, b1, w2, b2, w3, b3, ws1, bs1, ws2, bs2 = params

    # ---- build block-diagonal fused weights (tiny, ~75 KB) ----
    w1c = jnp.zeros((D_IN, FUSED_WIDTH), jnp.float32)
    w1c = w1c.at[:RGB_IN, :WIDTH].set(w1)          # rgb first layer (rows 6..14 stay zero)
    w1c = w1c.at[:, WIDTH:].set(ws1)               # shadow first layer uses all 15 features
    b1c = jnp.concatenate([b1, bs1], axis=-1)      # (1, 192) f32

    w3c = jnp.zeros((FUSED_WIDTH, OUT_DIM), jnp.float32)
    w3c = w3c.at[:WIDTH, :3].set(w3)               # rgb head -> lanes 0..2
    w3c = w3c.at[WIDTH:, 3:].set(ws2)              # shadow head -> lane 3
    b3c = jnp.concatenate([b3, bs2], axis=-1)      # (1, 4) f32

    if fuse_middle:
        w2c = jnp.zeros((FUSED_WIDTH, FUSED_WIDTH), jnp.float32)
        w2c = w2c.at[:WIDTH, :WIDTH].set(w2)
        w2c = w2c.at[WIDTH:, WIDTH:].set(jnp.eye(SHADOW_WIDTH, dtype=jnp.float32))
        b2c = jnp.concatenate([b2, jnp.zeros((1, SHADOW_WIDTH), jnp.float32)], axis=-1)
        kernel = _fused_kernel
    else:
        w2c, b2c = w2, b2
        kernel = _split_middle_kernel

    # Weights in compute dtype (bf16 by default); biases stay f32 and are added to the
    # f32 MXU accumulator inside the kernel.
    w1c = w1c.astype(compute_dtype)
    w2c = w2c.astype(compute_dtype)
    w3c = w3c.astype(compute_dtype)
    weights = (w1c, b1c, w2c, b2c, w3c, b3c)

    # ---- flatten rows, no wrapper-side padding ----
    orig_lead = x.shape[:-1]
    assert x.shape[-1] == D_IN, x.shape
    n = int(np.prod(orig_lead)) if orig_lead else 1
    xf = x.reshape(n, D_IN).astype(compute_dtype)

    tile = _round_up(max(8, min(tile_n, _round_up(n, 8))), 8)
    grid = (pl.cdiv(n, tile),)   # ragged last block handled by Pallas (rows independent)

    def whole(shape):
        return pl.BlockSpec(shape, lambda i: (0, 0))   # resident every grid step

    in_specs = [pl.BlockSpec((tile, D_IN), lambda i: (i, 0))]
    in_specs += [whole(p.shape) for p in weights]

    out = pl.pallas_call(
        kernel,
        out_shape=jax.ShapeDtypeStruct((n, OUT_DIM), jnp.float32),
        grid=grid,
        in_specs=in_specs,
        out_specs=pl.BlockSpec((tile, OUT_DIM), lambda i: (i, 0)),
        compiler_params=pltpu.CompilerParams(
            dimension_semantics=("parallel",)),
    )(xf, *weights)

    return out.reshape(*orig_lead, OUT_DIM)


# ------------------------- params & reference -------------------------
def init_params(key):
    """Deterministic synthetic init matching the PyTorch parameter shapes.
    Linear weights stored transposed as [in, out] (so y = x @ W + b)."""
    ks = jax.random.split(key, 5)

    def lin(k, fan_in, fan_out):
        bound = 1.0 / np.sqrt(fan_in)
        kw, kb = jax.random.split(k)
        w = jax.random.uniform(kw, (fan_in, fan_out), jnp.float32, -bound, bound)
        b = jax.random.uniform(kb, (1, fan_out), jnp.float32, -bound, bound)
        return w, b

    w1, b1 = lin(ks[0], RGB_IN, WIDTH)                 # Linear(6, 128)
    w2, b2 = lin(ks[1], WIDTH, WIDTH)                  # Linear(128, 128)
    w3, _ = lin(ks[2], WIDTH, 3)                       # Linear(128, 3)
    b3 = jnp.zeros((1, 3), jnp.float32)                # nn.init.constant_(net[-1].bias, 0)
    ws1, bs1 = lin(ks[3], SHADOW_IN, SHADOW_WIDTH)     # Linear(15, 64)
    ws2, bs2 = lin(ks[4], SHADOW_WIDTH, 1)             # Linear(64, 1)
    return (w1, b1, w2, b2, w3, b3, ws1, bs1, ws2, bs2)


def reference(x, params):
    """Pure-JAX f32 reference mirroring ShadowMLP.forward."""
    w1, b1, w2, b2, w3, b3, ws1, bs1, ws2, bs2 = params
    base = x[..., :K0_DIM]
    sph = x[..., -9:]
    h = jnp.maximum(base @ w1 + b1[0], 0.0)
    h = jnp.maximum(h @ w2 + b2[0], 0.0)
    rgb = h @ w3 + b3[0]
    xs = jnp.concatenate([base, sph], axis=-1)
    hs = jnp.maximum(xs @ ws1 + bs1[0], 0.0)
    shadow = hs @ ws2 + bs2[0]
    return jnp.concatenate([rgb, shadow], axis=-1)


if __name__ == "__main__":
    key = jax.random.PRNGKey(0)
    kx, kx2, kp = jax.random.split(key, 3)

    # small shapes: batch=2, seq=8, feature = k0_dim + 9 = 15
    x = jax.random.normal(kx, (2, 8, D_IN), jnp.float32)
    params = init_params(kp)
    ref = reference(x, params)

    # f32 structural check of BOTH kernel variants (fused / split middle layer).
    for fuse in (True, False):
        out = shadow_mlp(x, params, tile_n=8, compute_dtype=jnp.float32, fuse_middle=fuse)
        out = jax.block_until_ready(out)
        assert out.shape == (2, 8, OUT_DIM), out.shape
        np.testing.assert_allclose(np.asarray(out), np.asarray(ref), rtol=1e-4, atol=1e-4)

    # Ragged row count (no wrapper pad): n=21 with 8-row tiles -> masked last block.
    x2 = jax.random.normal(kx2, (3, 7, D_IN), jnp.float32)
    out2 = jax.block_until_ready(
        shadow_mlp(x2, params, tile_n=8, compute_dtype=jnp.float32))
    np.testing.assert_allclose(np.asarray(out2), np.asarray(reference(x2, params)),
                               rtol=1e-4, atol=1e-4)

    # Default fast path: bf16 inputs/weights, f32 accumulation, device-selected fusion.
    out_bf16 = jax.block_until_ready(shadow_mlp(x, params))
    np.testing.assert_allclose(np.asarray(out_bf16), np.asarray(ref),
                               rtol=5e-2, atol=5e-2)

    print("KERNEL_OK")
</pallas_src>

<mosaic_0001>
module attributes {stable_mosaic.version = 11 : i64} {
  func.func @_fused_kernel(%arg0: i32, %arg1: memref<8x15xf32, #tpu.memory_space<vmem>>, %arg2: memref<15x192xf32, #tpu.memory_space<vmem>>, %arg3: memref<1x192xf32, #tpu.memory_space<vmem>>, %arg4: memref<192x192xf32, #tpu.memory_space<vmem>>, %arg5: memref<1x192xf32, #tpu.memory_space<vmem>>, %arg6: memref<192x4xf32, #tpu.memory_space<vmem>>, %arg7: memref<1x4xf32, #tpu.memory_space<vmem>>, %arg8: memref<8x4xf32, #tpu.memory_space<vmem>>) attributes {dimension_semantics = [#tpu.dimension_semantics<parallel>], iteration_bounds = array<i64: 2>, scalar_prefetch = 0 : i64, scratch_operands = 0 : i64, tpu.core_type = #tpu.core_type<tc>, window_params = [{transform_indices = @transform_0, window_bounds = array<i64: 8, 15>}, {pipeline_mode = #tpu.pipeline_mode<synchronous>, transform_indices = @transform_1, window_bounds = array<i64: 15, 192>}, {pipeline_mode = #tpu.pipeline_mode<synchronous>, transform_indices = @transform_2, window_bounds = array<i64: 1, 192>}, {pipeline_mode = #tpu.pipeline_mode<synchronous>, transform_indices = @transform_3, window_bounds = array<i64: 192, 192>}, {pipeline_mode = #tpu.pipeline_mode<synchronous>, transform_indices = @transform_4, window_bounds = array<i64: 1, 192>}, {pipeline_mode = #tpu.pipeline_mode<synchronous>, transform_indices = @transform_5, window_bounds = array<i64: 192, 4>}, {pipeline_mode = #tpu.pipeline_mode<synchronous>, transform_indices = @transform_6, window_bounds = array<i64: 1, 4>}, {transform_indices = @transform_7, window_bounds = array<i64: 8, 4>}]} {
    %c0 = arith.constant 0 : index
    %c0_0 = arith.constant 0 : index
    %0 = vector.load %arg1[%c0, %c0_0] : memref<8x15xf32, #tpu.memory_space<vmem>>, vector<8x15xf32>
    %c0_1 = arith.constant 0 : index
    %c0_2 = arith.constant 0 : index
    %1 = vector.load %arg2[%c0_1, %c0_2] : memref<15x192xf32, #tpu.memory_space<vmem>>, vector<15x192xf32>
    %cst = arith.constant dense<0.000000e+00> : vector<8x192xf32>
    %2 = tpu.matmul %0, %1, %cst {dimension_numbers = #tpu.dot_dimension_numbers<[1], [0], [0], [1], [0, 0, 1, 1], [], []>} : vector<8x15xf32>, vector<15x192xf32>, vector<8x192xf32> -> vector<8x192xf32>
    %c0_3 = arith.constant 0 : index
    %c0_4 = arith.constant 0 : index
    %3 = vector.load %arg3[%c0_3, %c0_4] : memref<1x192xf32, #tpu.memory_space<vmem>>, vector<1x192xf32>
    %4 = vector.broadcast %3 : vector<1x192xf32> to vector<8x192xf32>
    %5 = arith.addf %2, %4 : vector<8x192xf32>
    %cst_5 = arith.constant 0.000000e+00 : f32
    %6 = vector.broadcast %cst_5 : f32 to vector<8x192xf32>
    %7 = arith.maximumf %5, %6 : vector<8x192xf32>
    %c0_6 = arith.constant 0 : index
    %c0_7 = arith.constant 0 : index
    %8 = vector.load %arg4[%c0_6, %c0_7] : memref<192x192xf32, #tpu.memory_space<vmem>>, vector<192x192xf32>
    %cst_8 = arith.constant dense<0.000000e+00> : vector<8x192xf32>
    %9 = tpu.matmul %7, %8, %cst_8 {dimension_numbers = #tpu.dot_dimension_numbers<[1], [0], [0], [1], [0, 0, 1, 1], [], []>} : vector<8x192xf32>, vector<192x192xf32>, vector<8x192xf32> -> vector<8x192xf32>
    %c0_9 = arith.constant 0 : index
    %c0_10 = arith.constant 0 : index
    %10 = vector.load %arg5[%c0_9, %c0_10] : memref<1x192xf32, #tpu.memory_space<vmem>>, vector<1x192xf32>
    %11 = vector.broadcast %10 : vector<1x192xf32> to vector<8x192xf32>
    %12 = arith.addf %9, %11 : vector<8x192xf32>
    %cst_11 = arith.constant 0.000000e+00 : f32
    %13 = vector.broadcast %cst_11 : f32 to vector<8x192xf32>
    %14 = arith.maximumf %12, %13 : vector<8x192xf32>
    %c0_12 = arith.constant 0 : index
    %c0_13 = arith.constant 0 : index
    %15 = vector.load %arg6[%c0_12, %c0_13] : memref<192x4xf32, #tpu.memory_space<vmem>>, vector<192x4xf32>
    %cst_14 = arith.constant dense<0.000000e+00> : vector<8x4xf32>
    %16 = tpu.matmul %14, %15, %cst_14 {dimension_numbers = #tpu.dot_dimension_numbers<[1], [0], [0], [1], [0, 0, 1, 1], [], []>} : vector<8x192xf32>, vector<192x4xf32>, vector<8x4xf32> -> vector<8x4xf32>
    %c0_15 = arith.constant 0 : index
    %c0_16 = arith.constant 0 : index
    %17 = vector.load %arg7[%c0_15, %c0_16] : memref<1x4xf32, #tpu.memory_space<vmem>>, vector<1x4xf32>
    %18 = vector.broadcast %17 : vector<1x4xf32> to vector<8x4xf32>
    %19 = arith.addf %16, %18 : vector<8x4xf32>
    %c0_17 = arith.constant 0 : index
    %c0_18 = arith.constant 0 : index
    %20 = vector.load %arg8[%c0_17, %c0_18] : memref<8x4xf32, #tpu.memory_space<vmem>>, vector<8x4xf32>
    tpu.vector_store %arg8[%c0_17, %c0_18], %19 {strides = array<i32>} : memref<8x4xf32, #tpu.memory_space<vmem>>, vector<8x4xf32>,
    return
  }
  func.func @transform_0(%arg0: i32) -> (i32, i32) {
    %c0_i32 = arith.constant 0 : i32
    %c0_i32_0 = arith.constant 0 : i32
    return %arg0, %c0_i32 : i32, i32
  }
  func.func @transform_1(%arg0: i32) -> (i32, i32) {
    %c0_i32 = arith.constant 0 : i32
    %c0_i32_0 = arith.constant 0 : i32
    %c0_i32_1 = arith.constant 0 : i32
    return %c0_i32, %c0_i32_0 : i32, i32
  }
  func.func @transform_2(%arg0: i32) -> (i32, i32) {
    %c0_i32 = arith.constant 0 : i32
    %c0_i32_0 = arith.constant 0 : i32
    %c0_i32_1 = arith.constant 0 : i32
    return %c0_i32, %c0_i32_0 : i32, i32
  }
  func.func @transform_3(%arg0: i32) -> (i32, i32) {
    %c0_i32 = arith.constant 0 : i32
    %c0_i32_0 = arith.constant 0 : i32
    %c0_i32_1 = arith.constant 0 : i32
    return %c0_i32, %c0_i32_0 : i32, i32
  }
  func.func @transform_4(%arg0: i32) -> (i32, i32) {
    %c0_i32 = arith.constant 0 : i32
    %c0_i32_0 = arith.constant 0 : i32
    %c0_i32_1 = arith.constant 0 : i32
    return %c0_i32, %c0_i32_0 : i32, i32
  }
  func.func @transform_5(%arg0: i32) -> (i32, i32) {
    %c0_i32 = arith.constant 0 : i32
    %c0_i32_0 = arith.constant 0 : i32
    %c0_i32_1 = arith.constant 0 : i32
    return %c0_i32, %c0_i32_0 : i32, i32
  }
  func.func @transform_6(%arg0: i32) -> (i32, i32) {
    %c0_i32 = arith.constant 0 : i32
    %c0_i32_0 = arith.constant 0 : i32
    %c0_i32_1 = arith.constant 0 : i32
    return %c0_i32, %c0_i32_0 : i32, i32
  }
  func.func @transform_7(%arg0: i32) -> (i32, i32) {
    %c0_i32 = arith.constant 0 : i32
    %c0_i32_0 = arith.constant 0 : i32
    return %arg0, %c0_i32 : i32, i32
  }
}

</mosaic_0001>

<bundles_post_ra>
// kernel: tpu_custom_call.1
= control target key start
LH: loop header
LB: loop body
LE: loop exit
PB: predicated region body
PF: predicated region fallthrough
CT: control target
= control target key end

     0   :  { %12 = vsyncpa [#allocation3], 0  ;;  %s758_s24 = smov 0   ;;  %s881_s0 = inlined_call_operand.vmem [shape: f32[16,15], index: 0, kind: input, shape index: {}]   ;;  %s882_s1 = inlined_call_operand.vmem [shape: f32[15,192], index: 1, kind: input, shape index: {}]   ;;  %s883_s2 = inlined_call_operand.vmem [shape: f32[1,192], index: 2, kind: input, shape index: {}]   ;;  %s884_s3 = inlined_call_operand.hbm [shape: f32[192,192], index: 3, kind: input, shape index: {}]   ;;  %s885_s4 = inlined_call_operand.vmem [shape: f32[1,192], index: 4, kind: input, shape index: {}]   ;;  %s886_s5 = inlined_call_operand.vmem [shape: f32[192,4], index: 5, kind: input, shape index: {}]   ;;  %s887_s6 = inlined_call_operand.vmem [shape: f32[1,4], index: 6, kind: input, shape index: {}]   ;;  %s888_s7 = inlined_call_operand.vmem [shape: f32[16,4], index: 7, kind: output, shape index: {}]  }
   0x1 LB: > { %s218_s27 = sshll.u32 %s884_s3, 4  ;;  %s633_s28 = sadd.s32 4294967295, %s713_s24   ;;  %s713_s24 = sphi %s758_s24, %s18_s24   ;;  %s219_s27 = int_to_ptr.hbm [resolvable:$true] %s218_s27 }
   0x2   : > { %p635_p0 = scmp.ge.s32.totalorder %s713_s24, 1  ;;  %p201_p1 = scmp.lt.s32.totalorder %s713_s24, 3 }
   0x3   : > { %p659_p2 = scmp.eq.s32.totalorder %s633_s28, 0  ;;  %s715_s29 = smov [#allocation2]  }
   0x4   : > { %p202_p3 = pnand %p635_p0, %p201_p1  ;;  %s220_s30 = sshll.u32 %s715_s29, 4  ;;  %s221_s30 = int_to_ptr.vmem [resolvable:$true] %s220_s30 }
   0x5   : > { %s716_s8 = smov 256   ;;  %s717_s9 = smov 16  }
   0x6   : > { %p655_p4 = pneg %p202_p3  ;;  %252 = sbr.rel (%p202_p3) target bundleno = 423 (0x1a7), region = 48 }
   0x8   : > { %p656_p5 = pnand %p659_p2, %p655_p4 }
   0xa   : > { %658 = dma.hbm_to_vmem [thread:$0]  (!%p656_p5), %s219_s27, 6144, %s221_s30, [#allocation3], %s716_s8, %s716_s8, %s717_s9  }
   0xb   : > { %708 = dma.done.wait (%p659_p2), [#allocation3], 6144  }
   0xc   : > { %710 = vsyncadd (%p659_p2), [#allocation3], 4294961152  ;;  %p283_p6 = scmp.lt.s32.totalorder %s633_s28, 1  ;;  %vm306_vm0 = vcmask 1046528   ;;  %v294_v0 = vld [vmem:[%s882_s1 + $0x10] sm:$0x7f] }
   0xd   : > { %v292_v1 = vld [vmem:[%s882_s1] sm:$0xff]  ;;  %v295_v2 = vld [vmem:[%s882_s1 + $0x18] sm:$0x7f]  ;;  %642 = vmatpush.msk.msra.mxu0 %vm306_vm0, %v294_v0  ;;  %vm302_vm1 = vcmask 121856   ;;  %v293_v4 = vld [vmem:[%s882_s1 + $0x8] sm:$0xff]  ;;  %vm409_vm2 = vcmask 523264  }
   0xe   : > { %s890_s28 = smov (!%p283_p6, %s633_s28), 1  ;;  %644 = vmatpush.msk.msra.mxu1 %vm306_vm0, %v295_v2  ;;  %v385_v5 = vld [vmem:[#allocation2 + $0xf0] sm:$0xff]  ;;  %v386_v6 = vld [vmem:[#allocation2 + $0xf8] sm:$0xff]  ;;  %v383_v7 = vld [vmem:[#allocation2 + $0xe0] sm:$0xff]  ;;  %vm566_vm3 = vcmask 31744  }
   0xf   : > { %s640_s10 = sshll.u32 %s890_s28, 3  ;;  %413 = vmatpush.msra.mxu2 %v385_v5  ;;  %328 = vmatpush.msra.mxu0 %v292_v1  ;;  %v384_v8 = vld [vmem:[#allocation2 + $0xe8] sm:$0xff]  ;;  %v381_v9 = vld [vmem:[#allocation2 + $0xd0] sm:$0xff]  ;;  %v382_v10 = vld [vmem:[#allocation2 + $0xd8] sm:$0xff] }
  0x10   : > { %s286_s13 = scalar_lea.vmem %s881_s0, %s640_s10  ;;  %348 = vmatpush.msra.mxu1 %v293_v4  ;;  %v379_v11 = vld [vmem:[#allocation2 + $0xc0] sm:$0xff]  ;;  %v380_v12 = vld [vmem:[#allocation2 + $0xc8] sm:$0xff]  ;;  %v377_v13 = vld [vmem:[#allocation2 + $0xb0] sm:$0xff]  ;;  %s290_s18 = scalar_lea.vmem %s888_s7, %s640_s10 }
  0x11   : > { %v291_v3 = vld [vmem:[%s286_s13] sm:$0xff]  ;;  %453 = vmatpush.msrb.mxu0 %v386_v6  ;;  %414 = vmatpush.msra.mxu2 %v383_v7  ;;  %v401_v14 = vld [vmem:[#allocation2 + $0x170] sm:$0xff]  ;;  %v402_v15 = vld [vmem:[#allocation2 + $0x178] sm:$0xff] }
  0x12   : > { %643 = vmatmul.msk.f32.vlgmr.msra.gmra.mxu0 %vm302_vm1, %v291_v3  ;;  %645 = vmatmul.msk.f32.vlgmr.msra.gmra.mxu1 %vm302_vm1, %v291_v3  ;;  %v399_v16 = vld [vmem:[#allocation2 + $0x160] sm:$0xff]  ;;  %v378_v17 = vld [vmem:[#allocation2 + $0xb8] sm:$0xff]  ;;  %v400_v19 = vld [vmem:[#allocation2 + $0x168] sm:$0xff] }
  0x13   : > { %454 = vmatpush.msrb.mxu0 %v384_v8  ;;  %415 = vmatpush.msra.mxu2 %v381_v9  ;;  %v375_v18 = vld [vmem:[#allocation2 + $0xa0] sm:$0xff]  ;;  %v397_v20 = vld [vmem:[#allocation2 + $0x150] sm:$0xff]  ;;  %v398_v21 = vld [vmem:[#allocation2 + $0x158] sm:$0xff] }
  0x14   : > { %441 = vmatpush.msra.mxu3 %v401_v14  ;;  %481 = vmatpush.msrb.mxu1 %v402_v15  ;;  %v376_v22 = vld [vmem:[#allocation2 + $0xa8] sm:$0xff]  ;;  %v373_v23 = vld [vmem:[#allocation2 + $0x90] sm:$0xff]  ;;  %v395_v24 = vld [vmem:[#allocation2 + $0x140] sm:$0xff] }
  0x15   : > { %455 = vmatpush.msrb.mxu0 %v382_v10  ;;  %416 = vmatpush.msra.mxu2 %v379_v11  ;;  %v396_v25 = vld [vmem:[#allocation2 + $0x148] sm:$0xff]  ;;  %v374_v26 = vld [vmem:[#allocation2 + $0x98] sm:$0xff]  ;;  %v371_v27 = vld [vmem:[#allocation2 + $0x80] sm:$0xff] }
  0x16   : > { %442 = vmatpush.msra.mxu3 %v399_v16  ;;  %482 = vmatpush.msrb.mxu1 %v400_v19  ;;  %v372_v28 = vld [vmem:[#allocation2 + $0x88] sm:$0xff]  ;;  %v369_v29 = vld [vmem:[#allocation2 + $0x70] sm:$0xff]  ;;  %v370_v30 = vld [vmem:[#allocation2 + $0x78] sm:$0xff] }
  0x17   : > { %456 = vmatpush.msrb.mxu0 %v380_v12  ;;  %417 = vmatpush.msra.mxu2 %v377_v13  ;;  %v367_v31 = vld [vmem:[#allocation2 + $0x60] sm:$0xff]  ;;  %v368_v32 = vld [vmem:[#allocation2 + $0x68] sm:$0xff]  ;;  %v365_v33 = vld [vmem:[#allocation2 + $0x50] sm:$0xff] }
  0x18   : > { %443 = vmatpush.msra.mxu3 %v397_v20  ;;  %483 = vmatpush.msrb.mxu1 %v398_v21  ;;  %v366_v34 = vld [vmem:[#allocation2 + $0x58] sm:$0xff]  ;;  %v363_v35 = vld [vmem:[#allocation2 + $0x40] sm:$0xff]  ;;  %v364_v36 = vld [vmem:[#allocation2 + $0x48] sm:$0xff] }
  0x19   : > { %457 = vmatpush.msrb.mxu0 %v378_v17  ;;  %418 = vmatpush.msra.mxu2 %v375_v18  ;;  %v361_v37 = vld [vmem:[#allocation2 + $0x30] sm:$0xff]  ;;  %v362_v38 = vld [vmem:[#allocation2 + $0x38] sm:$0xff]  ;;  %v359_v39 = vld [vmem:[#allocation2 + $0x20] sm:$0xff] }
  0x1a   : > { %444 = vmatpush.msra.mxu3 %v395_v24  ;;  %484 = vmatpush.msrb.mxu1 %v396_v25  ;;  %v393_v40 = vld [vmem:[#allocation2 + $0x130] sm:$0xff]  ;;  %v360_v41 = vld [vmem:[#allocation2 + $0x28] sm:$0xff]  ;;  %v394_v42 = vld [vmem:[#allocation2 + $0x138] sm:$0xff] }
  0x1b   : > { %458 = vmatpush.msrb.mxu0 %v376_v22  ;;  %419 = vmatpush.msra.mxu2 %v373_v23  ;;  %v357_v43 = vld [vmem:[#allocation2 + $0x10] sm:$0xff]  ;;  %v391_v44 = vld [vmem:[#allocation2 + $0x120] sm:$0xff]  ;;  %v358_v45 = vld [vmem:[#allocation2 + $0x18] sm:$0xff] }
  0x1c   : > { %445 = vmatpush.msra.mxu3 %v393_v40  ;;  %485 = vmatpush.msrb.mxu1 %v394_v42  ;;  %v392_v46 = vld [vmem:[#allocation2 + $0x128] sm:$0xff]  ;;  %v355_v47 = vld [vmem:[#allocation2] sm:$0xff]  ;;  %v389_v48 = vld [vmem:[#allocation2 + $0x110] sm:$0xff] }
  0x1d   : > { %459 = vmatpush.msrb.mxu0 %v374_v26  ;;  %420 = vmatpush.msra.mxu2 %v371_v27  ;;  %v356_v49 = vld [vmem:[#allocation2 + $0x8] sm:$0xff]  ;;  %v390_v50 = vld [vmem:[#allocation2 + $0x118] sm:$0xff]  ;;  %v387_v51 = vld [vmem:[#allocation2 + $0x100] sm:$0xff] }
  0x1e   : > { %446 = vmatpush.msra.mxu3 %v391_v44  ;;  %486 = vmatpush.msrb.mxu1 %v392_v46  ;;  %v388_v52 = vld [vmem:[#allocation2 + $0x108] sm:$0xff]  ;;  %v510_v53 = vld [vmem:[%s886_s5 + $0x78] sm:$0xff]  ;;  %v509_v54 = vld [vmem:[%s886_s5 + $0x70] sm:$0xff] }
  0x1f   : > { %460 = vmatpush.msrb.mxu0 %v372_v28  ;;  %421 = vmatpush.msra.mxu2 %v369_v29  ;;  %v508_v55 = vld [vmem:[%s886_s5 + $0x68] sm:$0xff]  ;;  %v518_v56 = vld [vmem:[%s886_s5 + $0xb8] sm:$0xff]  ;;  %v517_v57 = vld [vmem:[%s886_s5 + $0xb0] sm:$0xff] }
  0x20   : > { %447 = vmatpush.msra.mxu3 %v389_v48  ;;  %487 = vmatpush.msrb.mxu1 %v390_v50  ;;  %v507_v58 = vld [vmem:[%s886_s5 + $0x60] sm:$0xff]  ;;  %v516_v59 = vld [vmem:[%s886_s5 + $0xa8] sm:$0xff]  ;;  %v506_v60 = vld [vmem:[%s886_s5 + $0x58] sm:$0xff] }
  0x21   : > { %461 = vmatpush.msrb.mxu0 %v370_v30  ;;  %422 = vmatpush.msra.mxu2 %v367_v31  ;;  %v515_v61 = vld [vmem:[%s886_s5 + $0xa0] sm:$0xff]  ;;  %v505_v62 = vld [vmem:[%s886_s5 + $0x50] sm:$0xff]  ;;  %v504_v63 = vld [vmem:[%s886_s5 + $0x48] sm:$0xff] }
  0x22   : > { %448 = vmatpush.msra.mxu3 %v387_v51  ;;  %488 = vmatpush.msrb.mxu1 %v388_v52  ;;  %v503_v0 = vld [vmem:[%s886_s5 + $0x40] sm:$0xff]  ;;  %v502_v1 = vld [vmem:[%s886_s5 + $0x38] sm:$0xff]  ;;  %v501_v11 = vld [vmem:[%s886_s5 + $0x30] sm:$0xff] }
  0x23   : > { %462 = vmatpush.msrb.mxu0 %v368_v32  ;;  %423 = vmatpush.msra.mxu2 %v365_v33  ;;  %v296_v2 = vld [vmem:[%s883_s2] sm:$0x3]  ;;  %v514_v12 = vld [vmem:[%s886_s5 + $0x98] sm:$0xff]  ;;  %v500_v13 = vld [vmem:[%s886_s5 + $0x28] sm:$0xff] }
  0x24   : > { %526 = vmatpush.msrb.mxu3 %v510_v53  ;;  %554 = vmatpush.msra.mxu1 %v518_v56  ;;  %v298_v3 = vperm.slane %v296_v2, 0  ;;  %v299_v4 = vperm.slane %v296_v2, 1  ;;  %v513_v14 = vld [vmem:[%s886_s5 + $0x90] sm:$0xff]  ;;  %v499_v15 = vld [vmem:[%s886_s5 + $0x20] sm:$0xff]  ;;  %v512_v16 = vld [vmem:[%s886_s5 + $0x88] sm:$0xff] }
  0x25   : > { %463 = vmatpush.msrb.mxu0 %v366_v34  ;;  %424 = vmatpush.msra.mxu2 %v363_v35  ;;  %v498_v17 = vld [vmem:[%s886_s5 + $0x18] sm:$0xff]  ;;  %v511_v18 = vld [vmem:[%s886_s5 + $0x80] sm:$0xff]  ;;  %v497_v19 = vld [vmem:[%s886_s5 + $0x10] sm:$0xff] }
  0x26   : > { %527 = vmatpush.msrb.mxu3 %v509_v54  ;;  %555 = vmatpush.msra.mxu1 %v517_v57  ;;  %v496_v20 = vld [vmem:[%s886_s5 + $0x8] sm:$0xff]  ;;  %v495_v21 = vld [vmem:[%s886_s5] sm:$0xff] }
  0x27   : > { %464 = vmatpush.msrb.mxu0 %v364_v36  ;;  %425 = vmatpush.msra.mxu2 %v361_v37  ;;  %v403_v22 = vld [vmem:[%s885_s4] sm:$0x3] }
  0x28   : > { %528 = vmatpush.msrb.mxu3 %v508_v55  ;;  %556 = vmatpush.msra.mxu1 %v516_v59  ;;  %v406_v23 = vperm.slane %v403_v22, 1  ;;  %v405_v28 = vperm.slane %v403_v22, 0  ;;  %v672_v35 = vld [vmem:[%s887_s6] ss:$0 sm:$0xff] }
  0x29   : > { %465 = vmatpush.msrb.mxu0 %v362_v38  ;;  %426 = vmatpush.msra.mxu2 %v359_v39 }
  0x2a   : > { %529 = vmatpush.msrb.mxu3 %v507_v58  ;;  %557 = vmatpush.msra.mxu1 %v515_v61 }
  0x2b   : > { %466 = vmatpush.msrb.mxu0 %v360_v41  ;;  %427 = vmatpush.msra.mxu2 %v357_v43 }
  0x2c   : > { %530 = vmatpush.msrb.mxu3 %v506_v60  ;;  %558 = vmatpush.msra.mxu1 %v514_v12 }
  0x2d   : > { %467 = vmatpush.msrb.mxu0 %v358_v45  ;;  %428 = vmatpush.msra.mxu2 %v355_v47 }
  0x2e   : > { %531 = vmatpush.msrb.mxu3 %v505_v62  ;;  %559 = vmatpush.msra.mxu1 %v513_v14 }
  0x2f   : > { %468 = vmatpush.msrb.mxu0 %v356_v49 }
  0x30   : > { %532 = vmatpush.msrb.mxu3 %v504_v63  ;;  %560 = vmatpush.msra.mxu1 %v512_v16 }
  0x32   : > { %533 = vmatpush.msrb.mxu3 %v503_v0  ;;  %561 = vmatpush.msra.mxu1 %v511_v18 }
  0x34   : > { %534 = vmatpush.msrb.mxu3 %v502_v1 }
  0x36   : > { %535 = vmatpush.msrb.mxu3 %v501_v11 }
  0x38   : > { %536 = vmatpush.msrb.mxu3 %v500_v13 }
  0x3a   : > { %537 = vmatpush.msrb.mxu3 %v499_v15 }
  0x3c   : > { %538 = vmatpush.msrb.mxu3 %v498_v17 }
  0x3e   : > { %539 = vmatpush.msrb.mxu3 %v497_v19 }
  0x40   : > { %540 = vmatpush.msrb.mxu3 %v496_v20 }
  0x42   : > { %541 = vmatpush.msrb.mxu3 %v495_v21 }
  0x8f   : > { %v330_v5 = vpop.f32.mrf.mxu0  ;;  %v350_v6 = vpop.f32.mrf.mxu1 }
  0x90   : > { %v331_v7 = vadd.f32 %v330_v5, %v298_v3  ;;  %v351_v8 = vadd.f32 %v350_v6, %v299_v4 }
  0x92   : > { %v353_v9 = vmax.f32 %v331_v7, 0.0  ;;  %v354_v10 = vmax.f32 %v351_v8, 0.0 }
  0x94   : > { %429 = vmatmul.f32.vlgmr.msra.gmra.mxu2 %v353_v9  ;;  %469 = vmatmul.f32.vlgmr.msrb.gmra.mxu0 %v353_v9 }
  0x95   : > { %646 = vmatmul.msk.f32.vlgmr.msra.gmra.mxu3 %vm409_vm2, %v354_v10  ;;  %647 = vmatmul.msk.f32.vlgmr.msrb.gmra.mxu1 %vm409_vm2, %v354_v10 }
 0x111   : > { %v470_v24 = vpop.f32.mrf.mxu0 }
 0x112   : > { %v471_v25 = vadd.f32 %v470_v24, %v406_v23  ;;  %v490_v26 = vpop.f32.mrf.mxu1 }
 0x114   : > { %v491_v27 = vadd.f32 %v490_v26, %v471_v25 }
 0x116   : > { %v494_v29 = vmax.f32 %v491_v27, 0.0 }
 0x117   : > { %v430_v30 = vpop.f32.mrf.mxu2 }
 0x118   : > { %v431_v31 = vadd.f32 %v430_v30, %v405_v28  ;;  %648 = vmatmul.msk.f32.vlgmr.msra.gmra.mxu1 %vm409_vm2, %v494_v29  ;;  %v450_v32 = vpop.f32.mrf.mxu3 }
 0x11a   : > { %v451_v33 = vadd.f32 %v450_v32, %v431_v31 }
 0x11c   : > { %v493_v34 = vmax.f32 %v451_v33, 0.0 }
 0x11e   : > { %542 = vmatmul.f32.vlgmr.msrb.gmra.mxu3 %v493_v34 }
 0x195   : > { %v563_v38 = vpop.f32.mrf.mxu1 }
 0x1a1   : > { %v543_v36 = vpop.f32.mrf.mxu3 }
 0x1a2   : > { %v544_v37 = vadd.f32 %v672_v35, %v543_v36 }
 0x1a4   : > { %v564_v39 = vadd.f32 %v563_v38, %v544_v37 }
 0x1a6   : > { %567 = vst.msk [vmem:[%s290_s18] sm:$0xff] %vm566_vm3, %v564_v39 }
 0x1a7 PF: > { %s18_s24 = sadd.s32 1, %s713_s24  }
 0x1a8   : > { %p15_p7 = scmp.ge.s32.totalorder %s18_s24, 4  }
 0x1aa   :  { %17 = sbr.rel (!%p15_p7) target bundleno = 1 (0x1), region = 83 }
 0x1af   :  { %587 = vsyncpa [#allocation3], 1 }
 0x1b0   :  { %589 = vsyncpa [#allocation3 + $0x1], 1 }

</bundles_post_ra>
